<compile_context>
chip_gen: v7x
topology: tpu7x:2x2x1
jax: 0.10.0
libtpu: 0.0.40
codegen_flags: <defaults>
</compile_context>

<pallas_src>
import functools

import numpy as np
import jax
import jax.numpy as jnp
from jax.experimental import pallas as pl
from jax.experimental.pallas import tpu as pltpu


N_PAD = 128   # padded node count per node type (lane dim of all node-major slabs)
E_PAD = 128   # per-graph edge-score padding -> lane-dense (1, 2*E_PAD) output slab
SLAB_W = 16   # params-slab width = IN_PAD (>= in_f + 1 bias-marker row) = hid_f


# ------------------------------ fused kernel --------------------------------

def _fused_rgcn_pred_kernel(adj_ref, feat_ref, sel_ref, par_ref, o_ref, *,
                            hid_f, out_f):
  """Whole Model.forward in one launch: layer-1 GraphConvs (folded bias, fused
  ReLU), layer-2 GraphConvs, and the pos/neg HeteroDotProductPredictor."""
  f32, bf16 = jnp.float32, jnp.bfloat16

  aT_fol = adj_ref[0]   # [N_PAD, N_PAD] 'follows'    user->user (+ layer-1 bias row)
  aT_clk = adj_ref[1]   # [N_PAD, N_PAD] 'clicks'     user->item (+ layer-1 bias row)
  aT_cby = adj_ref[2]   # [N_PAD, N_PAD] 'clicked-by' item->user (+ layer-1 bias row)
  xuT = feat_ref[0]     # [SLAB_W, N_PAD] user features (feature-major, + bias marker)
  xiT = feat_ref[1]     # [SLAB_W, N_PAD] item features

  # static row offsets into the f32 params slab (all multiples of the f32 sublane tile 8)
  r_w1u, r_w1i = 0, 2 * hid_f
  r_w2u, r_w2i = 3 * hid_f, 3 * hid_f + 2 * out_f
  r_b2u, r_b2i = 3 * hid_f + 3 * out_f, 3 * hid_f + 4 * out_f
  w1u = par_ref[r_w1u:r_w1u + 2 * hid_f, :].astype(bf16)   # [2*hid, SLAB_W] follows|clicks (+bias col)
  w1i = par_ref[r_w1i:r_w1i + hid_f, :].astype(bf16)       # [hid,   SLAB_W] clicked-by     (+bias col)
  w2u = par_ref[r_w2u:r_w2u + 2 * out_f, :].astype(bf16)   # [2*out, hid]    follows|clicks
  w2i = par_ref[r_w2i:r_w2i + out_f, :].astype(bf16)       # [out,   hid]    clicked-by
  b2u = par_ref[r_b2u:r_b2u + out_f, 0:1]                  # [out, 1] f32 (b2_follows + b2_clicked-by)
  b2i = par_ref[r_b2i:r_b2i + out_f, 0:1]                  # [out, 1] f32 (b2_clicks)

  # ---- layer 1: transform-first GraphConv; relations sharing src 'user' batched ----
  xwT_u = jnp.dot(w1u, xuT, preferred_element_type=f32)    # [2*hid, N_PAD]; col Nu = layer-1 biases
  xwT_i = jnp.dot(w1i, xiT, preferred_element_type=f32)    # [hid,   N_PAD]
  # aggregate with padded normalized adjacencies (their virtual bias-node row adds the
  # layer-1 bias inside the MXU); HeteroGraphConv aggregate='sum'; fused ReLU (f32 epilogue)
  h1_uT = jnp.maximum(
      jnp.dot(xwT_u[:hid_f].astype(bf16), aT_fol, preferred_element_type=f32)
      + jnp.dot(xwT_i.astype(bf16), aT_cby, preferred_element_type=f32), 0.0)        # [hid, N_PAD]
  h1_iT = jnp.maximum(
      jnp.dot(xwT_u[hid_f:].astype(bf16), aT_clk, preferred_element_type=f32), 0.0)  # [hid, N_PAD]

  # ---- layer 2 (no ReLU, matches RGCN.forward); bias = tiny f32 broadcast add ----
  hwT_u = jnp.dot(w2u, h1_uT.astype(bf16), preferred_element_type=f32)               # [2*out, N_PAD]
  hwT_i = jnp.dot(w2i, h1_iT.astype(bf16), preferred_element_type=f32)               # [out,   N_PAD]
  h2_uT = (jnp.dot(hwT_u[:out_f].astype(bf16), aT_fol, preferred_element_type=f32)
           + jnp.dot(hwT_i.astype(bf16), aT_cby, preferred_element_type=f32) + b2u)  # [out, N_PAD]
  h2_iT = (jnp.dot(hwT_u[out_f:].astype(bf16), aT_clk, preferred_element_type=f32)
           + b2i)                                                                    # [out, N_PAD]

  # ---- HeteroDotProductPredictor on pos & neg 'clicks' edges (lane-dense output) ----
  huT = jnp.dot(h2_uT.astype(bf16), sel_ref[0], preferred_element_type=f32)          # [out, 2*E_PAD]
  hvT = jnp.dot(h2_iT.astype(bf16), sel_ref[1], preferred_element_type=f32)          # [out, 2*E_PAD]
  o_ref[...] = jnp.sum(huT * hvT, axis=0, keepdims=True)                             # [1,  2*E_PAD]


def fused_forward(adj_slab, feat_slab, sel_slab, par_slab, *, hid_f, out_f):
  kernel = functools.partial(_fused_rgcn_pred_kernel, hid_f=hid_f, out_f=out_f)
  vmem = pl.BlockSpec(memory_space=pltpu.MemorySpace.VMEM)
  return pl.pallas_call(
      kernel,
      out_shape=jax.ShapeDtypeStruct((1, sel_slab.shape[-1]), jnp.float32),
      in_specs=[vmem, vmem, vmem, vmem],
      out_specs=vmem,
  )(adj_slab, feat_slab, sel_slab, par_slab)


# ------------------------------- host glue ----------------------------------

def norm_adj(src, dst, n_src, n_dst):
  """Dense GraphConv(norm='both') adjacency: A[d,s] * deg_out(s)^-.5 * deg_in(d)^-.5"""
  a = np.zeros((n_dst, n_src), np.float32)
  np.add.at(a, (np.asarray(dst), np.asarray(src)), 1.0)
  deg_out = np.clip(a.sum(axis=0), 1.0, None)
  deg_in = np.clip(a.sum(axis=1), 1.0, None)
  a = a * (deg_out[None, :] ** -0.5) * (deg_in[:, None] ** -0.5)
  return a


def pad_adj_T(a, n_src, n_dst, bias_row):
  """Transposed normalized adjacency padded to [N_PAD, N_PAD] with a virtual
  bias-node row: row `bias_row` is 1.0 for every real dst node, so the
  aggregation matmul also adds the (folded) layer-1 bias."""
  p = np.zeros((N_PAD, N_PAD), np.float32)
  p[:n_src, :n_dst] = a.T
  p[bias_row, :n_dst] = 1.0
  return p


def pad_feat_T(x, n_nodes, bias_node):
  """Feature-major node features padded to [SLAB_W, N_PAD]; row `in_f` carries a
  1.0 marker at the virtual bias-node column so W1's bias column lands there."""
  x = np.asarray(x)
  p = np.zeros((SLAB_W, N_PAD), np.float32)
  p[:x.shape[1], :n_nodes] = x.T
  p[x.shape[1], bias_node] = 1.0
  return p


# --------------------------------- main --------------------------------------

if __name__ == "__main__":
  Nu, Ni = 8, 8                       # users, items
  in_f, hid_f, out_f = 8, 16, 8
  assert in_f + 1 <= SLAB_W and hid_f == SLAB_W
  assert Nu + 1 <= N_PAD and Ni + 1 <= N_PAD

  # positive heterograph g
  follows_src = np.array([0, 1, 2, 3, 4, 5, 6, 7])
  follows_dst = np.array([1, 2, 3, 4, 5, 6, 7, 0])
  clicks_src = np.array([0, 0, 1, 2, 3, 4, 5, 6, 7, 7])
  clicks_dst = np.array([1, 3, 0, 2, 4, 5, 6, 7, 0, 2])
  cb_src, cb_dst = clicks_dst, clicks_src   # 'clicked-by' = reverse of 'clicks'

  # negative graph (same nodes, corrupted dst for etype='clicks', k=1)
  neg_src = clicks_src
  neg_dst = np.array([5, 6, 7, 0, 1, 2, 3, 4, 6, 5])

  e_pos, e_neg = len(clicks_src), len(neg_src)
  assert e_pos <= E_PAD and e_neg <= E_PAD, "edge-score packing assumes E <= E_PAD per graph"

  a_fol = norm_adj(follows_src, follows_dst, Nu, Nu)   # [Nu_dst, Nu_src]
  a_clk = norm_adj(clicks_src, clicks_dst, Nu, Ni)     # [Ni_dst, Nu_src]
  a_cby = norm_adj(cb_src, cb_dst, Ni, Nu)             # [Nu_dst, Ni_src]

  # node features
  k1, k2, k3 = jax.random.split(jax.random.PRNGKey(0), 3)
  x_user = jax.random.normal(k1, (Nu, in_f), jnp.float32)
  x_item = jax.random.normal(k2, (Ni, in_f), jnp.float32)

  def xavier(key, fi, fo):
    lim = float(np.sqrt(6.0 / (fi + fo)))
    return jax.random.uniform(key, (fi, fo), jnp.float32, -lim, lim)

  rels = ["follows", "clicks", "clicked-by"]
  wkeys = jax.random.split(jax.random.PRNGKey(42), 2 * len(rels))
  bkeys = jax.random.split(k3, 2 * len(rels))
  params1 = {r: (xavier(wkeys[i], in_f, hid_f),
                 0.1 * jax.random.normal(bkeys[i], (hid_f,), jnp.float32))
             for i, r in enumerate(rels)}
  params2 = {r: (xavier(wkeys[len(rels) + i], hid_f, out_f),
                 0.1 * jax.random.normal(bkeys[len(rels) + i], (out_f,), jnp.float32))
             for i, r in enumerate(rels)}

  # ---- slab 1: adjacencies (bf16), transposed + padded + virtual bias-node rows ----
  adj_slab = jnp.asarray(
      np.stack([pad_adj_T(a_fol, Nu, Nu, Nu),      # 'follows'    user -> user
                pad_adj_T(a_clk, Nu, Ni, Nu),      # 'clicks'     user -> item
                pad_adj_T(a_cby, Ni, Nu, Ni)]),    # 'clicked-by' item -> user
      dtype=jnp.bfloat16)

  # ---- slab 2: features (bf16), feature-major + padded + bias marker ----
  feat_slab = jnp.asarray(np.stack([pad_feat_T(x_user, Nu, Nu),
                                    pad_feat_T(x_item, Ni, Ni)]), dtype=jnp.bfloat16)

  # ---- slab 3: one-hot edge-endpoint selectors (bf16), cols = pos | neg edges ----
  s_src = np.zeros((N_PAD, 2 * E_PAD), np.float32)
  s_dst = np.zeros((N_PAD, 2 * E_PAD), np.float32)
  s_src[np.asarray(clicks_src), np.arange(e_pos)] = 1.0
  s_dst[np.asarray(clicks_dst), np.arange(e_pos)] = 1.0
  s_src[np.asarray(neg_src), E_PAD + np.arange(e_neg)] = 1.0
  s_dst[np.asarray(neg_dst), E_PAD + np.arange(e_neg)] = 1.0
  sel_slab = jnp.asarray(np.stack([s_src, s_dst]), dtype=jnp.bfloat16)

  # ---- slab 4: all parameters (f32; weight blocks cast to bf16 in-kernel) ----
  w1f, b1f = map(np.asarray, params1["follows"])
  w1c, b1c = map(np.asarray, params1["clicks"])
  w1y, b1y = map(np.asarray, params1["clicked-by"])
  w2f, b2f = map(np.asarray, params2["follows"])
  w2c, b2c = map(np.asarray, params2["clicks"])
  w2y, b2y = map(np.asarray, params2["clicked-by"])

  rows = 3 * hid_f + 5 * out_f
  slab = np.zeros((rows, SLAB_W), np.float32)
  # layer-1 weights (user-src relations batched) + folded biases in column `in_f`
  slab[0:hid_f, :in_f] = w1f.T;               slab[0:hid_f, in_f] = b1f
  slab[hid_f:2 * hid_f, :in_f] = w1c.T;       slab[hid_f:2 * hid_f, in_f] = b1c
  slab[2 * hid_f:3 * hid_f, :in_f] = w1y.T;   slab[2 * hid_f:3 * hid_f, in_f] = b1y
  # layer-2 weights
  slab[3 * hid_f:3 * hid_f + out_f, :hid_f] = w2f.T
  slab[3 * hid_f + out_f:3 * hid_f + 2 * out_f, :hid_f] = w2c.T
  slab[3 * hid_f + 2 * out_f:3 * hid_f + 3 * out_f, :hid_f] = w2y.T
  # layer-2 biases (post-aggregation; kept as f32 broadcast adds, pre-combined per dst type)
  slab[3 * hid_f + 3 * out_f:3 * hid_f + 4 * out_f, 0] = b2f + b2y   # user dst
  slab[3 * hid_f + 4 * out_f:3 * hid_f + 5 * out_f, 0] = b2c         # item dst
  par_slab = jnp.asarray(slab)

  # ---- forward: h = sage(g, x); (pred(g, h, 'clicks'), pred(neg_g, h, 'clicks')) ----
  scores = fused_forward(adj_slab, feat_slab, sel_slab, par_slab,
                         hid_f=hid_f, out_f=out_f)
  scores = jax.block_until_ready(scores)

  pos_score = scores[0, :e_pos].reshape(e_pos, 1)
  neg_score = scores[0, E_PAD:E_PAD + e_neg].reshape(e_neg, 1)

  # --------------------------- plain-JAX references ---------------------------
  bf16, f32 = jnp.bfloat16, jnp.float32
  adjs = {
      "follows":    ("user", "user", jnp.asarray(a_fol)),
      "clicks":     ("user", "item", jnp.asarray(a_clk)),
      "clicked-by": ("item", "user", jnp.asarray(a_cby)),
  }
  x = {"user": x_user, "item": x_item}

  # (a) exact-f32 reference (original module semantics)
  def gc_f32(a, x_, w, b):
    return a @ (x_ @ w) + b

  h1 = {}
  for rel, (st, dt, a) in adjs.items():
    w, b = params1[rel]
    y = gc_f32(a, x[st], w, b)
    h1[dt] = y if dt not in h1 else h1[dt] + y
  h1 = {k: jnp.maximum(v, 0.0) for k, v in h1.items()}
  h2 = {}
  for rel, (st, dt, a) in adjs.items():
    w, b = params2[rel]
    y = gc_f32(a, h1[st], w, b)
    h2[dt] = y if dt not in h2 else h2[dt] + y
  ref_pos = jnp.sum(h2["user"][clicks_src] * h2["item"][clicks_dst], -1, keepdims=True)
  ref_neg = jnp.sum(h2["user"][neg_src] * h2["item"][neg_dst], -1, keepdims=True)

  # (b) reference mirroring the kernel's bf16 dot-boundary casts (f32 accumulation)
  def gc_mx(a, x_, w, b, bias_rounded):
    xw = jnp.dot(x_.astype(bf16), w.astype(bf16), preferred_element_type=f32)
    y = jnp.dot(a.astype(bf16), xw.astype(bf16), preferred_element_type=f32)
    return y + (b.astype(bf16).astype(f32) if bias_rounded else b)

  h1m = {}
  for rel, (st, dt, a) in adjs.items():
    w, b = params1[rel]
    y = gc_mx(a, x[st], w, b, True)      # layer-1 bias lives in the bf16-cast W1 slab
    h1m[dt] = y if dt not in h1m else h1m[dt] + y
  h1m = {k: jnp.maximum(v, 0.0) for k, v in h1m.items()}
  h2m = {}
  for rel, (st, dt, a) in adjs.items():
    w, b = params2[rel]
    y = gc_mx(a, h1m[st], w, b, False)   # layer-2 bias added in f32 in the kernel
    h2m[dt] = y if dt not in h2m else h2m[dt] + y
  h2u_q = h2m["user"].astype(bf16).astype(f32)   # selector-gather rounds h2 to bf16
  h2i_q = h2m["item"].astype(bf16).astype(f32)
  refm_pos = jnp.sum(h2u_q[clicks_src] * h2i_q[clicks_dst], -1, keepdims=True)
  refm_neg = jnp.sum(h2u_q[neg_src] * h2i_q[neg_dst], -1, keepdims=True)

  assert pos_score.shape == (e_pos, 1) and neg_score.shape == (e_neg, 1)
  # tight check vs the bf16-mirrored reference (validates packing/folding/wiring)
  assert jnp.allclose(pos_score, refm_pos, atol=2e-2, rtol=2e-2)
  assert jnp.allclose(neg_score, refm_neg, atol=2e-2, rtol=2e-2)
  # loose sanity check vs exact-f32 semantics (bf16 MXU operands => loosened tolerance)
  assert jnp.allclose(pos_score, ref_pos, atol=0.25, rtol=0.25)
  assert jnp.allclose(neg_score, ref_neg, atol=0.25, rtol=0.25)
  print("KERNEL_OK")
</pallas_src>

<mosaic_0001>
module attributes {stable_mosaic.version = 11 : i64} {
  func.func @_fused_rgcn_pred_kernel(%arg0: memref<3x128x128xbf16, #tpu.memory_space<vmem>>, %arg1: memref<2x16x128xbf16, #tpu.memory_space<vmem>>, %arg2: memref<2x128x256xbf16, #tpu.memory_space<vmem>>, %arg3: memref<88x16xf32, #tpu.memory_space<vmem>>, %arg4: memref<1x256xf32, #tpu.memory_space<vmem>>) attributes {dimension_semantics = [], scalar_prefetch = 0 : i64, scratch_operands = 0 : i64, tpu.core_type = #tpu.core_type<tc>} {
    %c0 = arith.constant 0 : index
    %c0_0 = arith.constant 0 : index
    %c0_1 = arith.constant 0 : index
    %0 = vector.load %arg0[%c0, %c0_0, %c0_1] : memref<3x128x128xbf16, #tpu.memory_space<vmem>>, vector<1x128x128xbf16>
    %1 = vector.shape_cast %0 : vector<1x128x128xbf16> to vector<128x128xbf16>
    %c1 = arith.constant 1 : index
    %c0_2 = arith.constant 0 : index
    %c0_3 = arith.constant 0 : index
    %2 = vector.load %arg0[%c1, %c0_2, %c0_3] : memref<3x128x128xbf16, #tpu.memory_space<vmem>>, vector<1x128x128xbf16>
    %3 = vector.shape_cast %2 : vector<1x128x128xbf16> to vector<128x128xbf16>
    %c2 = arith.constant 2 : index
    %c0_4 = arith.constant 0 : index
    %c0_5 = arith.constant 0 : index
    %4 = vector.load %arg0[%c2, %c0_4, %c0_5] : memref<3x128x128xbf16, #tpu.memory_space<vmem>>, vector<1x128x128xbf16>
    %5 = vector.shape_cast %4 : vector<1x128x128xbf16> to vector<128x128xbf16>
    %c0_6 = arith.constant 0 : index
    %c0_7 = arith.constant 0 : index
    %c0_8 = arith.constant 0 : index
    %6 = vector.load %arg1[%c0_6, %c0_7, %c0_8] : memref<2x16x128xbf16, #tpu.memory_space<vmem>>, vector<1x16x128xbf16>
    %7 = vector.shape_cast %6 : vector<1x16x128xbf16> to vector<16x128xbf16>
    %c1_9 = arith.constant 1 : index
    %c0_10 = arith.constant 0 : index
    %c0_11 = arith.constant 0 : index
    %8 = vector.load %arg1[%c1_9, %c0_10, %c0_11] : memref<2x16x128xbf16, #tpu.memory_space<vmem>>, vector<1x16x128xbf16>
    %9 = vector.shape_cast %8 : vector<1x16x128xbf16> to vector<16x128xbf16>
    %c0_12 = arith.constant 0 : index
    %c0_13 = arith.constant 0 : index
    %10 = vector.load %arg3[%c0_12, %c0_13] : memref<88x16xf32, #tpu.memory_space<vmem>>, vector<32x16xf32>
    %11 = arith.truncf %10 : vector<32x16xf32> to vector<32x16xbf16>
    %c32 = arith.constant 32 : index
    %c0_14 = arith.constant 0 : index
    %12 = vector.load %arg3[%c32, %c0_14] : memref<88x16xf32, #tpu.memory_space<vmem>>, vector<16x16xf32>
    %13 = arith.truncf %12 : vector<16x16xf32> to vector<16x16xbf16>
    %c48 = arith.constant 48 : index
    %c0_15 = arith.constant 0 : index
    %14 = vector.load %arg3[%c48, %c0_15] : memref<88x16xf32, #tpu.memory_space<vmem>>, vector<16x16xf32>
    %15 = arith.truncf %14 : vector<16x16xf32> to vector<16x16xbf16>
    %c64 = arith.constant 64 : index
    %c0_16 = arith.constant 0 : index
    %16 = vector.load %arg3[%c64, %c0_16] : memref<88x16xf32, #tpu.memory_space<vmem>>, vector<8x16xf32>
    %17 = arith.truncf %16 : vector<8x16xf32> to vector<8x16xbf16>
    %c72 = arith.constant 72 : index
    %c0_17 = arith.constant 0 : index
    %18 = vector.load %arg3[%c72, %c0_17] : memref<88x16xf32, #tpu.memory_space<vmem>>, vector<8x1xf32>
    %c80 = arith.constant 80 : index
    %c0_18 = arith.constant 0 : index
    %19 = vector.load %arg3[%c80, %c0_18] : memref<88x16xf32, #tpu.memory_space<vmem>>, vector<8x1xf32>
    %cst = arith.constant dense<0.000000e+00> : vector<32x128xf32>
    %20 = tpu.matmul %11, %7, %cst {dimension_numbers = #tpu.dot_dimension_numbers<[1], [0], [0], [1], [0, 0, 1, 1], [], []>} : vector<32x16xbf16>, vector<16x128xbf16>, vector<32x128xf32> -> vector<32x128xf32>
    %cst_19 = arith.constant dense<0.000000e+00> : vector<16x128xf32>
    %21 = tpu.matmul %13, %9, %cst_19 {dimension_numbers = #tpu.dot_dimension_numbers<[1], [0], [0], [1], [0, 0, 1, 1], [], []>} : vector<16x16xbf16>, vector<16x128xbf16>, vector<16x128xf32> -> vector<16x128xf32>
    %22 = vector.extract_strided_slice %20 {offsets = [0, 0], sizes = [16, 128], strides = [1, 1]} : vector<32x128xf32> to vector<16x128xf32>
    %23 = arith.truncf %22 : vector<16x128xf32> to vector<16x128xbf16>
    %cst_20 = arith.constant dense<0.000000e+00> : vector<16x128xf32>
    %24 = tpu.matmul %23, %1, %cst_20 {dimension_numbers = #tpu.dot_dimension_numbers<[1], [0], [0], [1], [0, 0, 1, 1], [], []>} : vector<16x128xbf16>, vector<128x128xbf16>, vector<16x128xf32> -> vector<16x128xf32>
    %25 = arith.truncf %21 : vector<16x128xf32> to vector<16x128xbf16>
    %cst_21 = arith.constant dense<0.000000e+00> : vector<16x128xf32>
    %26 = tpu.matmul %25, %5, %cst_21 {dimension_numbers = #tpu.dot_dimension_numbers<[1], [0], [0], [1], [0, 0, 1, 1], [], []>} : vector<16x128xbf16>, vector<128x128xbf16>, vector<16x128xf32> -> vector<16x128xf32>
    %27 = arith.addf %24, %26 : vector<16x128xf32>
    %cst_22 = arith.constant 0.000000e+00 : f32
    %28 = vector.broadcast %cst_22 : f32 to vector<16x128xf32>
    %29 = arith.maximumf %27, %28 : vector<16x128xf32>
    %30 = vector.extract_strided_slice %20 {offsets = [16, 0], sizes = [16, 128], strides = [1, 1]} : vector<32x128xf32> to vector<16x128xf32>
    %31 = arith.truncf %30 : vector<16x128xf32> to vector<16x128xbf16>
    %cst_23 = arith.constant dense<0.000000e+00> : vector<16x128xf32>
    %32 = tpu.matmul %31, %3, %cst_23 {dimension_numbers = #tpu.dot_dimension_numbers<[1], [0], [0], [1], [0, 0, 1, 1], [], []>} : vector<16x128xbf16>, vector<128x128xbf16>, vector<16x128xf32> -> vector<16x128xf32>
    %cst_24 = arith.constant 0.000000e+00 : f32
    %33 = vector.broadcast %cst_24 : f32 to vector<16x128xf32>
    %34 = arith.maximumf %32, %33 : vector<16x128xf32>
    %35 = arith.truncf %29 : vector<16x128xf32> to vector<16x128xbf16>
    %cst_25 = arith.constant dense<0.000000e+00> : vector<16x128xf32>
    %36 = tpu.matmul %15, %35, %cst_25 {dimension_numbers = #tpu.dot_dimension_numbers<[1], [0], [0], [1], [0, 0, 1, 1], [], []>} : vector<16x16xbf16>, vector<16x128xbf16>, vector<16x128xf32> -> vector<16x128xf32>
    %37 = arith.truncf %34 : vector<16x128xf32> to vector<16x128xbf16>
    %cst_26 = arith.constant dense<0.000000e+00> : vector<8x128xf32>
    %38 = tpu.matmul %17, %37, %cst_26 {dimension_numbers = #tpu.dot_dimension_numbers<[1], [0], [0], [1], [0, 0, 1, 1], [], []>} : vector<8x16xbf16>, vector<16x128xbf16>, vector<8x128xf32> -> vector<8x128xf32>
    %39 = vector.extract_strided_slice %36 {offsets = [0, 0], sizes = [8, 128], strides = [1, 1]} : vector<16x128xf32> to vector<8x128xf32>
    %40 = arith.truncf %39 : vector<8x128xf32> to vector<8x128xbf16>
    %cst_27 = arith.constant dense<0.000000e+00> : vector<8x128xf32>
    %41 = tpu.matmul %40, %1, %cst_27 {dimension_numbers = #tpu.dot_dimension_numbers<[1], [0], [0], [1], [0, 0, 1, 1], [], []>} : vector<8x128xbf16>, vector<128x128xbf16>, vector<8x128xf32> -> vector<8x128xf32>
    %42 = arith.truncf %38 : vector<8x128xf32> to vector<8x128xbf16>
    %cst_28 = arith.constant dense<0.000000e+00> : vector<8x128xf32>
    %43 = tpu.matmul %42, %5, %cst_28 {dimension_numbers = #tpu.dot_dimension_numbers<[1], [0], [0], [1], [0, 0, 1, 1], [], []>} : vector<8x128xbf16>, vector<128x128xbf16>, vector<8x128xf32> -> vector<8x128xf32>
    %44 = arith.addf %41, %43 : vector<8x128xf32>
    %45 = vector.broadcast %18 : vector<8x1xf32> to vector<8x128xf32>
    %46 = arith.addf %44, %45 : vector<8x128xf32>
    %47 = vector.extract_strided_slice %36 {offsets = [8, 0], sizes = [8, 128], strides = [1, 1]} : vector<16x128xf32> to vector<8x128xf32>
    %48 = arith.truncf %47 : vector<8x128xf32> to vector<8x128xbf16>
    %cst_29 = arith.constant dense<0.000000e+00> : vector<8x128xf32>
    %49 = tpu.matmul %48, %3, %cst_29 {dimension_numbers = #tpu.dot_dimension_numbers<[1], [0], [0], [1], [0, 0, 1, 1], [], []>} : vector<8x128xbf16>, vector<128x128xbf16>, vector<8x128xf32> -> vector<8x128xf32>
    %50 = vector.broadcast %19 : vector<8x1xf32> to vector<8x128xf32>
    %51 = arith.addf %49, %50 : vector<8x128xf32>
    %52 = arith.truncf %46 : vector<8x128xf32> to vector<8x128xbf16>
    %c0_30 = arith.constant 0 : index
    %c0_31 = arith.constant 0 : index
    %c0_32 = arith.constant 0 : index
    %53 = vector.load %arg2[%c0_30, %c0_31, %c0_32] : memref<2x128x256xbf16, #tpu.memory_space<vmem>>, vector<1x128x256xbf16>
    %54 = vector.shape_cast %53 : vector<1x128x256xbf16> to vector<128x256xbf16>
    %cst_33 = arith.constant dense<0.000000e+00> : vector<8x256xf32>
    %55 = tpu.matmul %52, %54, %cst_33 {dimension_numbers = #tpu.dot_dimension_numbers<[1], [0], [0], [1], [0, 0, 1, 1], [], []>} : vector<8x128xbf16>, vector<128x256xbf16>, vector<8x256xf32> -> vector<8x256xf32>
    %56 = arith.truncf %51 : vector<8x128xf32> to vector<8x128xbf16>
    %c1_34 = arith.constant 1 : index
    %c0_35 = arith.constant 0 : index
    %c0_36 = arith.constant 0 : index
    %57 = vector.load %arg2[%c1_34, %c0_35, %c0_36] : memref<2x128x256xbf16, #tpu.memory_space<vmem>>, vector<1x128x256xbf16>
    %58 = vector.shape_cast %57 : vector<1x128x256xbf16> to vector<128x256xbf16>
    %cst_37 = arith.constant dense<0.000000e+00> : vector<8x256xf32>
    %59 = tpu.matmul %56, %58, %cst_37 {dimension_numbers = #tpu.dot_dimension_numbers<[1], [0], [0], [1], [0, 0, 1, 1], [], []>} : vector<8x128xbf16>, vector<128x256xbf16>, vector<8x256xf32> -> vector<8x256xf32>
    %60 = arith.mulf %55, %59 : vector<8x256xf32>
    %cst_38 = arith.constant dense<0.000000e+00> : vector<256xf32>
    %61 = vector.multi_reduction <add>, %60, %cst_38 [0] : vector<8x256xf32> to vector<256xf32>
    %62 = vector.shape_cast %61 : vector<256xf32> to vector<1x256xf32>
    %c0_39 = arith.constant 0 : index
    %c0_40 = arith.constant 0 : index
    %63 = vector.load %arg4[%c0_39, %c0_40] : memref<1x256xf32, #tpu.memory_space<vmem>>, vector<1x256xf32>
    tpu.vector_store %arg4[%c0_39, %c0_40], %62 {strides = array<i32>} : memref<1x256xf32, #tpu.memory_space<vmem>>, vector<1x256xf32>,
    return
  }
}

</mosaic_0001>

<bundles_post_ra>
// kernel: tpu_custom_call.1
= control target key start
LH: loop header
LB: loop body
LE: loop exit
PB: predicated region body
PF: predicated region fallthrough
CT: control target
= control target key end

     0   :  { %9 = vsyncpa [#allocation3], 0  ;;  %s1768_s0 = inlined_call_operand.hbm [shape: bf16[3,128,128], index: 0, kind: input, shape index: {}]   ;;  %s1769_s1 = inlined_call_operand.vmem [shape: bf16[2,16,128], index: 1, kind: input, shape index: {}]   ;;  %s1770_s2 = inlined_call_operand.hbm [shape: bf16[2,128,256], index: 2, kind: input, shape index: {}]   ;;  %s1771_s3 = inlined_call_operand.vmem [shape: f32[88,16], index: 3, kind: input, shape index: {}]   ;;  %s1772_s4 = inlined_call_operand.hbm [shape: f32[1,256], index: 4, kind: output, shape index: {}]  }
   0x1   :  { %10 = vsyncpa [#allocation6], 0 }
   0x2   :  { %11 = vsyncpa [#allocation4], 0  ;;  %s1491_s15 = smov [#allocation2]   ;;  %s1419_s19 = scalar_lea.hbm %s1768_s0, 3072 }
   0x3   :  { %s17_s16 = sshll.u32 %s1491_s15, 4  ;;  %p1420_p0 = scmp.ne.s32.totalorder %s1768_s0, %s1419_s19  ;;  %s18_s16 = int_to_ptr.vmem [resolvable:$true] %s17_s16 }
   0x4   :  { %p1423_p1 = scmp.lt.u32.totalorder %s1419_s19, %s1768_s0 }
   0x6   :  { %p1425_p2 = pnand %p1423_p1, %p1420_p0 }
   0x8   :  { %1428 = shalt.err (!%p1425_p2)
}
   0x9   :  { %s1429_s24 = scalar_lea.vmem %s18_s16, 3072  ;;  %p1434_p4 = scmp.lt.s32.totalorder %s18_s16, %s18_s16 }
   0xa   :  { %p1430_p3 = scmp.ne.s32.totalorder %s18_s16, %s1429_s24  ;;  %p1435_p5 = scmp.lt.s32.totalorder %s1429_s24, %s1429_s24 }
   0xc   :  { %p1436_p6 = por %p1435_p5, %p1434_p4 }
   0xe   :  { %p1437_p7 = pnand %p1436_p6, %p1430_p3 }
  0x10   :  { %1440 = shalt.err (!%p1437_p7)
}
  0x11   :  { %s1492_s25 = smov 64   ;;  %s1493_s26 = smov 4  }
  0x12   :  { %23 = dma.hbm_to_vmem [thread:$0]  %s1768_s0, 3072, %s18_s16, [#allocation3], %s1492_s25, %s1492_s25, %s1493_s26  }
  0x13   :  { %s1494_s29 = smov [#allocation5]   ;;  %s1441_s7 = scalar_lea.hbm %s1770_s2, 4096 }
  0x14   :  { %s31_s30 = sshll.u32 %s1494_s29, 4  ;;  %p1442_p8 = scmp.ne.s32.totalorder %s1770_s2, %s1441_s7  ;;  %s32_s30 = int_to_ptr.vmem [resolvable:$true] %s31_s30 }
  0x15   :  { %p1445_p9 = scmp.lt.u32.totalorder %s1441_s7, %s1770_s2 }
  0x17   :  { %p1447_p10 = pnand %p1445_p9, %p1442_p8 }
  0x19   :  { %1450 = shalt.err (!%p1447_p10)
}
  0x1a   :  { %s1451_s12 = scalar_lea.vmem %s32_s30, 4096  ;;  %p1456_p12 = scmp.lt.s32.totalorder %s32_s30, %s32_s30 }
  0x1b   :  { %p1452_p11 = scmp.ne.s32.totalorder %s32_s30, %s1451_s12  ;;  %p1457_p13 = scmp.lt.s32.totalorder %s1451_s12, %s1451_s12 }
  0x1d   :  { %p1458_p0 = por %p1457_p13, %p1456_p12 }
  0x1f   :  { %p1459_p1 = pnand %p1458_p0, %p1452_p11 }
  0x21   :  { %1462 = shalt.err (!%p1459_p1)
}
  0x22   :  { %s1495_s0 = smov 128   ;;  %s1496_s13 = smov 8  }
  0x23   :  { %37 = dma.hbm_to_vmem [thread:$0]  %s1770_s2, 4096, %s32_s30, [#allocation6], %s1495_s0, %s1495_s0, %s1496_s13  }
  0x24   :  { %1485 = dma.done.wait [#allocation3], 3072  }
  0x25   :  { %1486 = vsyncadd [#allocation3], 4294964224 }
  0x26   :  { %1487 = dma.done.wait [#allocation6], 4096  }
  0x27   :  { %1488 = vsyncadd [#allocation6], 4294963200  ;;  %v1497_v0 = vmov 0.0   ;;  %vm1498_vm0 = vmmov 0   ;;  %v1345_v1 = vld [vmem:[%s1769_s1] sm:$0xff]   ;;  %v1346_v2 = vld [vmem:[%s1769_s1 + $0x8] sm:$0xff]  }
  0x28   :  { %1191 = vmatprep.subr.bf16.mxu1 %v1497_v0  ;;  %1193 = vmatprep.mubr.msk.bf16.mxu1 %vm1498_vm0, %v1497_v0  ;;  %v102_v3 = vld [vmem:[%s1771_s3] sm:$0xff]  ;;  %v103_v4 = vld [vmem:[%s1771_s3 + $0x8] sm:$0xff]  ;;  %vm124_vm1 = vcmask 130048   ;;  %v104_v8 = vld [vmem:[%s1771_s3 + $0x10] sm:$0xff] }
  0x29   :  { %1185 = vmatprep.subr.bf16.mxu0 %v1345_v1  ;;  %v108_v5 = vld [vmem:[%s1771_s3 + $0x20] sm:$0xff]  ;;  %1192 = vmatpush3.bf16.msra.mxu1 %v1346_v2  ;;  %v106_v6 = vpack.c.bf16 %v103_v4, %v102_v3  ;;  %v109_v7 = vld [vmem:[%s1771_s3 + $0x28] sm:$0xff]  ;;  %v105_v9 = vld [vmem:[%s1771_s3 + $0x18] sm:$0xff]  ;;  %v1499_v4 = vmov 0  }
  0x2a   :  { %1186 = vmatpush3.bf16.msra.mxu0 %v1345_v1  ;;  %v110_v10 = vpack.c.bf16 %v109_v7, %v108_v5  ;;  %v107_v11 = vpack.c.bf16 %v105_v9, %v104_v8  ;;  %v1579_v12 = vld [vmem:[#allocation2 + $0x80] sm:$0xff]   ;;  %1237 = vmatprep.subr.bf16.mxu1 %v1497_v0  ;;  %v1587_v14 = vld [vmem:[#allocation2 + $0x88] sm:$0xff]   ;;  %v1599_v16 = vld [vmem:[#allocation2 + $0x90] sm:$0xff]  }
  0x2b   :  { %1197 = vmatprep.subr.bf16.mxu0 %v1497_v0  ;;  %1187 = vmatprep.mubr.msk.bf16.mxu0 %vm124_vm1, %v106_v6  ;;  %v1583_v13 = vld [vmem:[#allocation2 + $0x40] sm:$0xff]   ;;  %v1591_v15 = vld [vmem:[#allocation2 + $0x48] sm:$0xff]   ;;  %v1603_v17 = vld [vmem:[#allocation2 + $0x50] sm:$0xff]  }
  0x2c   :  { %1194 = vmatmul.mubr.msk.bf16.vlgmr.msra.gmra.mrb[0].mxu1 %vm124_vm1, %v110_v10  ;;  %v1607_v18 = vld [vmem:[#allocation2 + $0x98] sm:$0xff]   ;;  %v1615_v20 = vld [vmem:[#allocation2 + $0xa0] sm:$0xff]   ;;  %v1623_v22 = vld [vmem:[#allocation2 + $0xa8] sm:$0xff]   ;;  %1344 = vset.pattern.permute.xlu0 %v1499_v4 }
  0x2d   :  { %1188 = vmatmul.mubr.msk.bf16.vlgmr.msra.gmra.mrb[0].mxu0 %vm124_vm1, %v107_v11  ;;  %1238 = vmatpush3.bf16.msra.mxu1 %v1583_v13  ;;  %v1611_v19 = vld [vmem:[#allocation2 + $0x58] sm:$0xff]   ;;  %v1617_v21 = vld [vmem:[#allocation2 + $0x60] sm:$0xff]   ;;  %v1625_v23 = vld [vmem:[#allocation2 + $0x68] sm:$0xff]  }
  0x2e   :  { %1198 = vmatpush3.bf16.msra.mxu0 %v1579_v12  ;;  %1239 = vmatprep.subr.bf16.mxu1 %v1497_v0  ;;  %v1631_v24 = vld [vmem:[#allocation2 + $0xb0] sm:$0xff]   ;;  %v1643_v26 = vld [vmem:[#allocation2 + $0xb8] sm:$0xff]   ;;  %v1651_v34 = vld [vmem:[#allocation2] sm:$0xff]  }
  0x2f   :  { %1199 = vmatprep.subr.bf16.mxu0 %v1497_v0  ;;  %1213 = vmatprep.mubr.msk.bf16.mxu0 %vm1498_vm0, %v1497_v0  ;;  %v1633_v25 = vld [vmem:[#allocation2 + $0x70] sm:$0xff]   ;;  %v1646_v27 = vld [vmem:[#allocation2 + $0x78] sm:$0xff]   ;;  %v1654_v40 = vld [vmem:[#allocation2 + $0x8] sm:$0xff]  }
  0x30   :  { %1253 = vmatprep.mubr.msk.bf16.mxu1 %vm1498_vm0, %v1497_v0  ;;  %v1662_v41 = vld [vmem:[#allocation2 + $0x10] sm:$0xff]   ;;  %v1666_v42 = vld [vmem:[#allocation2 + $0x18] sm:$0xff]   ;;  %v1670_v43 = vld [vmem:[#allocation2 + $0x20] sm:$0xff]  }
  0x31   :  { %1240 = vmatpush3.bf16.msra.mxu1 %v1591_v15  ;;  %v1674_v44 = vld [vmem:[#allocation2 + $0x28] sm:$0xff]   ;;  %v1678_v45 = vld [vmem:[#allocation2 + $0x30] sm:$0xff]   ;;  %v1370_v46 = vld [vmem:[#allocation2 + $0x38] sm:$0xff]  }
  0x32   :  { %1200 = vmatpush3.bf16.msra.mxu0 %v1587_v14  ;;  %1241 = vmatprep.subr.bf16.mxu1 %v1497_v0  ;;  %v114_v53 = vld [vmem:[%s1771_s3 + $0x40] sm:$0xff]  ;;  %v111_v62 = vld [vmem:[%s1771_s3 + $0x30] sm:$0xff]  ;;  %v112_v63 = vld [vmem:[%s1771_s3 + $0x38] sm:$0xff] }
  0x33   :  { %1201 = vmatprep.subr.bf16.mxu0 %v1497_v0  ;;  %v115_v55 = vpack.c.bf16 %v114_v53, %v114_v53  ;;  %v113_v2 = vpack.c.bf16 %v112_v63, %v111_v62  ;;  %v116_v3 = vld [vmem:[%s1771_s3 + $0x48] sm:$0xff]  ;;  %v117_v5 = vld [vmem:[%s1771_s3 + $0x50] sm:$0xff]  ;;  %s1501_s3 = smov [#allocation7]  }
  0x34   :  { %677 = vperm.xlu0 %1344, %v116_v3   ;;  %s1047_s13 = sshll.u32 %s1501_s3, 4  ;;  %s1048_s13 = int_to_ptr.vmem [resolvable:$true] %s1047_s13 }
  0x35   :  { %1242 = vmatpush3.bf16.msra.mxu1 %v1603_v17  ;;  %s1463_s14 = scalar_lea.vmem %s1048_s13, 32  ;;  %p1468_p3 = scmp.lt.s32.totalorder %s1048_s13, %s1048_s13 }
  0x36   :  { %1202 = vmatpush3.bf16.msra.mxu0 %v1599_v16  ;;  %1243 = vmatprep.subr.bf16.mxu1 %v1497_v0  ;;  %p1464_p2 = scmp.ne.s32.totalorder %s1048_s13, %s1463_s14  ;;  %p1469_p4 = scmp.lt.s32.totalorder %s1463_s14, %s1463_s14 }
  0x37   :  { %1203 = vmatprep.subr.bf16.mxu0 %v1497_v0 }
  0x38   :  { %684 = vperm.xlu0 %1344, %v117_v5   ;;  %p1470_p5 = por %p1469_p4, %p1468_p3 }
  0x39   :  { %1244 = vmatpush3.bf16.msra.mxu1 %v1611_v19 }
  0x3a   :  { %1204 = vmatpush3.bf16.msra.mxu0 %v1607_v18  ;;  %1245 = vmatprep.subr.bf16.mxu1 %v1497_v0  ;;  %p1471_p6 = pnand %p1470_p5, %p1464_p2 }
  0x3b   :  { %1205 = vmatprep.subr.bf16.mxu0 %v1497_v0 }
  0x3d   :  { %1246 = vmatpush3.bf16.msra.mxu1 %v1617_v21 }
  0x3e   :  { %1206 = vmatpush3.bf16.msra.mxu0 %v1615_v20  ;;  %1247 = vmatprep.subr.bf16.mxu1 %v1497_v0 }
  0x3f   :  { %1207 = vmatprep.subr.bf16.mxu0 %v1497_v0 }
  0x41   :  { %1248 = vmatpush3.bf16.msra.mxu1 %v1625_v23 }
  0x42   :  { %1208 = vmatpush3.bf16.msra.mxu0 %v1623_v22  ;;  %1249 = vmatprep.subr.bf16.mxu1 %v1497_v0 }
  0x43   :  { %1209 = vmatprep.subr.bf16.mxu0 %v1497_v0 }
  0x45   :  { %1250 = vmatpush3.bf16.msra.mxu1 %v1633_v25 }
  0x46   :  { %1210 = vmatpush3.bf16.msra.mxu0 %v1631_v24  ;;  %1251 = vmatprep.subr.bf16.mxu1 %v1497_v0 }
  0x47   :  { %1211 = vmatprep.subr.bf16.mxu0 %v1497_v0 }
  0x49   :  { %1252 = vmatpush3.bf16.msra.mxu1 %v1646_v27 }
  0x4a   :  { %1212 = vmatpush3.bf16.msra.mxu0 %v1643_v26  ;;  %1263 = vmatprep.subr.bf16.mxu1 %v1497_v0 }
  0x4b   :  { %1217 = vmatprep.subr.bf16.mxu0 %v1497_v0 }
  0xff   :  { %v223_v28 = vpop.f32.mrb[0].mxu1 }
 0x100   :  { %v1189_v29 = vpop.f32.mrb[0].mxu0  ;;  %v1195_v30 = vpop.f32.mrb[1].mxu1 }
 0x101   :  { %v165_v31 = vpop.f32.mrb[1].mxu0  ;;  %v226_v32 = vpop.f32.mrb[2].mxu1  ;;  %v1389_v30 = vld [vmem:[#allocation5 + $0x30] ss:$8 sps:$4 sm:$0xff]  }
 0x102   :  { %v1190_v33 = vpop.f32.mrb[2].mxu0  ;;  %v231_v35 = vpack.c.bf16 %v226_v32, %v223_v28  ;;  %v1196_v37 = vpop.f32.mrb[3].mxu1  ;;  %v1391_v28 = vld [vmem:[#allocation5 + $0x34] ss:$8 sps:$4 sm:$0xff]   ;;  %v1397_v32 = vld [vmem:[#allocation5 + $0x44] ss:$8 sps:$4 sm:$0xff]  }
 0x103   :  { %v412_v36 = vpack.c.bf16 %v1190_v33, %v1189_v29  ;;  %v168_v38 = vpop.f32.mrb[3].mxu0  ;;  %v1394_v29 = vld [vmem:[#allocation5 + $0xb4] ss:$8 sps:$4 sm:$0xff]   ;;  %v1400_v33 = vld [vmem:[#allocation5 + $0xc4] ss:$8 sps:$4 sm:$0xff]  }
 0x104   :  { %v230_v39 = vpack.c.bf16 %v168_v38, %v165_v31  ;;  %1214 = vmatmul.mubr.bf16.vlgmr.msra.gmra.mrb[4].mxu0 %v231_v35  ;;  %v1392_v31 = vld [vmem:[#allocation5 + $0xb0] ss:$8 sps:$4 sm:$0xff]   ;;  %v1398_v35 = vld [vmem:[#allocation5 + $0xc0] ss:$8 sps:$4 sm:$0xff]   ;;  %v1406_v37 = vld [vmem:[#allocation5 + $0xd4] ss:$8 sps:$4 sm:$0xff]  }
 0x105   :  { %1254 = vmatmul.mubr.bf16.vlgmr.msra.gmra.mrb[4].mxu1 %v412_v36  ;;  %1218 = vmatpush3.bf16.msra.mxu0 %v1651_v34  ;;  %v1403_v36 = vld [vmem:[#allocation5 + $0x54] ss:$8 sps:$4 sm:$0xff]   ;;  %v1401_v38 = vld [vmem:[#allocation5 + $0x50] ss:$8 sps:$4 sm:$0xff]  }
 0x106   :  { %1233 = vmatprep.mubr.msk.bf16.mxu0 %vm1498_vm0, %v1497_v0  ;;  %1219 = vmatprep.subr.bf16.mxu0 %v1497_v0 }
 0x107   :  { %1265 = vmatprep.mubr.msk.bf16.mxu1 %vm1498_vm0, %v1497_v0 }
 0x109   :  { %1220 = vmatpush3.bf16.msra.mxu0 %v1654_v40 }
 0x10a   :  { %1221 = vmatprep.subr.bf16.mxu0 %v1497_v0 }
 0x10d   :  { %1222 = vmatpush3.bf16.msra.mxu0 %v1662_v41 }
 0x10e   :  { %1223 = vmatprep.subr.bf16.mxu0 %v1497_v0 }
 0x111   :  { %1224 = vmatpush3.bf16.msra.mxu0 %v1666_v42 }
 0x112   :  { %1225 = vmatprep.subr.bf16.mxu0 %v1497_v0 }
 0x115   :  { %1226 = vmatpush3.bf16.msra.mxu0 %v1670_v43 }
 0x116   :  { %1227 = vmatprep.subr.bf16.mxu0 %v1497_v0 }
 0x119   :  { %1228 = vmatpush3.bf16.msra.mxu0 %v1674_v44 }
 0x11a   :  { %1229 = vmatprep.subr.bf16.mxu0 %v1497_v0 }
 0x11d   :  { %1230 = vmatpush3.bf16.msra.mxu0 %v1678_v45 }
 0x11e   :  { %1231 = vmatprep.subr.bf16.mxu0 %v1497_v0 }
 0x121   :  { %1232 = vmatpush3.bf16.msra.mxu0 %v1370_v46 }
 0x122   :  { %1257 = vmatprep.subr.bf16.mxu0 %v1497_v0 }
 0x124   :  { %1234 = vmatmul.mubr.bf16.vlgmr.msra.gmra.mrb[4].mxu0 %v230_v39  ;;  %v1404_v39 = vld [vmem:[#allocation5 + $0xd0] ss:$8 sps:$4 sm:$0xff]  }
 0x125   :  { %1259 = vmatprep.mubr.msk.bf16.mxu0 %vm1498_vm0, %v1497_v0 }
 0x1d8   :  { %v495_v47 = vpop.f32.mrb[4].mxu1 }
 0x1d9   :  { %v1255_v48 = vpop.f32.mrb[5].mxu1  ;;  %v502_v50 = vmax.f32 %v495_v47, 0.0  ;;  %v1416_v47 = vld [vmem:[#allocation5 + $0xf0] ss:$8 sps:$4 sm:$0xff]  }
 0x1da   :  { %v498_v49 = vpop.f32.mrb[6].mxu1 }
 0x1db   :  { %v503_v51 = vmax.f32 %v498_v49, 0.0  ;;  %v1256_v52 = vpop.f32.mrb[7].mxu1 }
 0x1dc   :  { %v678_v52 = vpop.permute.xlu0 %677 }
 0x1dd   :  { %v549_v54 = vpack.c.bf16 %v503_v51, %v502_v50 }
 0x1df   :  { %1264 = vmatpush3.bf16.msra.mxu1 %v549_v54 }
 0x1e0   :  { %1269 = vmatprep.subr.bf16.mxu1 %v1497_v0 }
 0x1e2   :  { %1266 = vmatmul.mubr.msk.bf16.vlgmr.msra.gmra.mrb[8].mxu1 %vm124_vm1, %v115_v55  ;;  %v685_v55 = vpop.permute.xlu0 %684 }
 0x1e3   :  { %1270 = vmatpush3.bf16.msra.mxu1 %v1579_v12  ;;  %1285 = vmatprep.mubr.msk.bf16.mxu1 %vm1498_vm0, %v1497_v0 }
 0x1e4   :  { %1271 = vmatprep.subr.bf16.mxu1 %v1497_v0 }
 0x1e7   :  { %1272 = vmatpush3.bf16.msra.mxu1 %v1587_v14 }
 0x1e8   :  { %1273 = vmatprep.subr.bf16.mxu1 %v1497_v0 }
 0x1eb   :  { %1274 = vmatpush3.bf16.msra.mxu1 %v1599_v16 }
 0x1ec   :  { %1275 = vmatprep.subr.bf16.mxu1 %v1497_v0 }
 0x1ef   :  { %1276 = vmatpush3.bf16.msra.mxu1 %v1607_v18  ;;  %v1373_v18 = vld [vmem:[#allocation5 + $0x4] ss:$8 sps:$4 sm:$0xff]  }
 0x1f0   :  { %1277 = vmatprep.subr.bf16.mxu1 %v1497_v0 }
 0x1f3   :  { %1278 = vmatpush3.bf16.msra.mxu1 %v1615_v20  ;;  %v1376_v20 = vld [vmem:[#allocation5 + $0x84] ss:$8 sps:$4 sm:$0xff]  }
 0x1f4   :  { %1279 = vmatprep.subr.bf16.mxu1 %v1497_v0 }
 0x1f7   :  { %1280 = vmatpush3.bf16.msra.mxu1 %v1623_v22  ;;  %v403_v56 = vpop.f32.mrb[4].mxu0  ;;  %v1382_v22 = vld [vmem:[#allocation5 + $0x94] ss:$8 sps:$4 sm:$0xff]  }
 0x1f8   :  { %1281 = vmatprep.subr.bf16.mxu1 %v1497_v0  ;;  %v1235_v57 = vpop.f32.mrb[5].mxu0  ;;  %v410_v59 = vmax.f32 %v403_v56, 0.0 }
 0x1f9   :  { %v406_v58 = vpop.f32.mrb[6].mxu0 }
 0x1fa   :  { %v411_v60 = vmax.f32 %v406_v58, 0.0  ;;  %v1236_v61 = vpop.f32.mrb[7].mxu0 }
 0x1fb   :  { %1282 = vmatpush3.bf16.msra.mxu1 %v1631_v24  ;;  %v1385_v24 = vld [vmem:[#allocation5 + $0x24] ss:$8 sps:$4 sm:$0xff]  }
 0x1fc   :  { %1283 = vmatprep.subr.bf16.mxu1 %v1497_v0  ;;  %v504_v1 = vpack.c.bf16 %v411_v60, %v410_v59 }
 0x1fe   :  { %1258 = vmatpush3.bf16.msra.mxu0 %v504_v1 }
 0x1ff   :  { %1284 = vmatpush3.bf16.msra.mxu1 %v1643_v26  ;;  %1289 = vmatprep.subr.bf16.mxu0 %v1497_v0  ;;  %v1383_v26 = vld [vmem:[#allocation5 + $0x20] ss:$8 sps:$4 sm:$0xff]  }
 0x200   :  { %1309 = vmatprep.subr.bf16.mxu1 %v1497_v0 }
 0x201   :  { %1260 = vmatmul.mubr.msk.bf16.vlgmr.msra.gmra.mrb[8].mxu0 %vm124_vm1, %v113_v2 }
 0x202   :  { %1290 = vmatpush3.bf16.msra.mxu0 %v1651_v34  ;;  %1305 = vmatprep.mubr.msk.bf16.mxu0 %vm1498_vm0, %v1497_v0  ;;  %v1395_v34 = vld [vmem:[#allocation5 + $0x40] ss:$8 sps:$4 sm:$0xff]  }
 0x203   :  { %1291 = vmatprep.subr.bf16.mxu0 %v1497_v0 }
 0x206   :  { %1292 = vmatpush3.bf16.msra.mxu0 %v1654_v40  ;;  %v1409_v40 = vld [vmem:[#allocation5 + $0x64] ss:$8 sps:$4 sm:$0xff]  }
 0x207   :  { %1293 = vmatprep.subr.bf16.mxu0 %v1497_v0 }
 0x20a   :  { %1294 = vmatpush3.bf16.msra.mxu0 %v1662_v41  ;;  %v1412_v41 = vld [vmem:[#allocation5 + $0xe4] ss:$8 sps:$4 sm:$0xff]  }
 0x20b   :  { %1295 = vmatprep.subr.bf16.mxu0 %v1497_v0 }
 0x20e   :  { %1296 = vmatpush3.bf16.msra.mxu0 %v1666_v42  ;;  %v1407_v42 = vld [vmem:[#allocation5 + $0x60] ss:$8 sps:$4 sm:$0xff]  }
 0x20f   :  { %1297 = vmatprep.subr.bf16.mxu0 %v1497_v0 }
 0x212   :  { %1298 = vmatpush3.bf16.msra.mxu0 %v1670_v43  ;;  %v1410_v43 = vld [vmem:[#allocation5 + $0xe0] ss:$8 sps:$4 sm:$0xff]  }
 0x213   :  { %1299 = vmatprep.subr.bf16.mxu0 %v1497_v0 }
 0x216   :  { %1300 = vmatpush3.bf16.msra.mxu0 %v1674_v44  ;;  %v1415_v44 = vld [vmem:[#allocation5 + $0x74] ss:$8 sps:$4 sm:$0xff]  }
 0x217   :  { %1301 = vmatprep.subr.bf16.mxu0 %v1497_v0 }
 0x21a   :  { %1302 = vmatpush3.bf16.msra.mxu0 %v1678_v45  ;;  %v1418_v45 = vld [vmem:[#allocation5 + $0xf4] ss:$8 sps:$4 sm:$0xff]  }
 0x21b   :  { %1303 = vmatprep.subr.bf16.mxu0 %v1497_v0 }
 0x21e   :  { %1304 = vmatpush3.bf16.msra.mxu0 %v1370_v46  ;;  %v1413_v46 = vld [vmem:[#allocation5 + $0x70] ss:$8 sps:$4 sm:$0xff]  }
 0x21f   :  { %824 = vmatprep.subr.bf16.mxu0 %v1373_v18  ;;  %v1500_v18 = vmov 1966171168  }
 0x2b5   :  { %v587_v6 = vpop.f32.mrb[8].mxu1 }
 0x2b6   :  { %v594_v7 = vpack.c.bf16 %v587_v6, %v587_v6  ;;  %v1267_v8 = vpop.f32.mrb[9].mxu1 }
 0x2b7   :  { %v590_v9 = vpop.f32.mrb[10].mxu1 }
 0x2b8   :  { %1286 = vmatmul.mubr.bf16.vlgmr.msra.gmra.mrb[12].mxu1 %v594_v7  ;;  %v1268_v10 = vpop.f32.mrb[11].mxu1 }
 0x2b9   :  { %1310 = vmatpush3.bf16.msra.mxu1 %v1583_v13  ;;  %1325 = vmatprep.mubr.msk.bf16.mxu1 %vm1498_vm0, %v1497_v0 }
 0x2ba   :  { %1311 = vmatprep.subr.bf16.mxu1 %v1497_v0 }
 0x2bd   :  { %1312 = vmatpush3.bf16.msra.mxu1 %v1591_v15 }
 0x2be   :  { %1313 = vmatprep.subr.bf16.mxu1 %v1497_v0 }
 0x2c1   :  { %1314 = vmatpush3.bf16.msra.mxu1 %v1603_v17  ;;  %v1371_v17 = vld [vmem:[#allocation5] ss:$8 sps:$4 sm:$0xff]  }
 0x2c2   :  { %1315 = vmatprep.subr.bf16.mxu1 %v1497_v0 }
 0x2c5   :  { %1316 = vmatpush3.bf16.msra.mxu1 %v1611_v19  ;;  %v1374_v19 = vld [vmem:[#allocation5 + $0x80] ss:$8 sps:$4 sm:$0xff]  }
 0x2c6   :  { %1317 = vmatprep.subr.bf16.mxu1 %v1497_v0 }
 0x2c9   :  { %1318 = vmatpush3.bf16.msra.mxu1 %v1617_v21  ;;  %v1379_v21 = vld [vmem:[#allocation5 + $0x14] ss:$8 sps:$4 sm:$0xff]  }
 0x2ca   :  { %1319 = vmatprep.subr.bf16.mxu1 %v1497_v0 }
 0x2cd   :  { %1320 = vmatpush3.bf16.msra.mxu1 %v1625_v23  ;;  %v1380_v23 = vld [vmem:[#allocation5 + $0x90] ss:$8 sps:$4 sm:$0xff]  }
 0x2ce   :  { %1321 = vmatprep.subr.bf16.mxu1 %v1497_v0 }
 0x2d1   :  { %1322 = vmatpush3.bf16.msra.mxu1 %v1633_v25  ;;  %v1388_v25 = vld [vmem:[#allocation5 + $0xa4] ss:$8 sps:$4 sm:$0xff]  }
 0x2d2   :  { %1323 = vmatprep.subr.bf16.mxu1 %v1497_v0  ;;  %v1377_v0 = vld [vmem:[#allocation5 + $0x10] ss:$8 sps:$4 sm:$0xff]  }
 0x2d4   :  { %v542_v11 = vpop.f32.mrb[8].mxu0 }
 0x2d5   :  { %1324 = vmatpush3.bf16.msra.mxu1 %v1646_v27  ;;  %v593_v12 = vpack.c.bf16 %v542_v11, %v542_v11  ;;  %v1261_v13 = vpop.f32.mrb[9].mxu0  ;;  %v1386_v27 = vld [vmem:[#allocation5 + $0xa0] ss:$8 sps:$4 sm:$0xff]  }
 0x2d6   :  { %v545_v14 = vpop.f32.mrb[10].mxu0  ;;  %963 = vmatprep.subr.bf16.mxu1 %v1376_v20  ;;  %v1024_v20 = vlaneseq }
 0x2d7   :  { %v681_v15 = vpack.c.bf16 %v545_v14, %v545_v14  ;;  %1306 = vmatmul.mubr.bf16.vlgmr.msra.gmra.mrb[12].mxu0 %v593_v12  ;;  %v1262_v16 = vpop.f32.mrb[11].mxu0 }
 0x2d8   :  { %856 = vmatprep.mubr.bf16.mxu0 %v1499_v4  ;;  %825 = vmatpush1.bf16.msra.mxu0 %v1371_v17  ;;  %vm1038_vm2 = vcmp.lt.s32.totalorder %v1024_v20, 256 }
 0x2d9   :  { %1326 = vmatmul.mubr.bf16.vlgmr.msra.gmra.mrb[16].mxu1 %v681_v15  ;;  %826 = vmatprep.subr.bf16.mxu0 %v1379_v21 }
 0x2da   :  { %995 = vmatprep.mubr.bf16.mxu1 %v1499_v4  ;;  %964 = vmatpush1.bf16.msra.mxu1 %v1374_v19  ;;  %v1022_v19 = vunpack.c.l.s4 %v1500_v18 }
 0x2db   :  { %965 = vmatprep.subr.bf16.mxu1 %v1382_v22 }
 0x2dc   :  { %827 = vmatpush1.bf16.msra.mxu0 %v1377_v0 }
 0x2dd   :  { %828 = vmatprep.subr.bf16.mxu0 %v1385_v24  ;;  %v1023_v24 = vunpack.c.0.s8 %v1022_v19 }
 0x2de   :  { %966 = vmatpush1.bf16.msra.mxu1 %v1380_v23 }
 0x2df   :  { %967 = vmatprep.subr.bf16.mxu1 %v1388_v25  ;;  %v1025_v25 = vshrl.u32 %v1024_v20, 7 }
 0x2e0   :  { %829 = vmatpush1.bf16.msra.mxu0 %v1383_v26 }
 0x2e1   :  { %830 = vmatprep.subr.bf16.mxu0 %v1391_v28 }
 0x2e2   :  { %968 = vmatpush1.bf16.msra.mxu1 %v1386_v27 }
 0x2e3   :  { %969 = vmatprep.subr.bf16.mxu1 %v1394_v29 }
 0x2e4   :  { %831 = vmatpush1.bf16.msra.mxu0 %v1389_v30  ;;  %v1026_v30 = vsub.s32 %v1023_v24, %v1025_v25 }
 0x2e5   :  { %832 = vmatprep.subr.bf16.mxu0 %v1397_v32 }
 0x2e6   :  { %970 = vmatpush1.bf16.msra.mxu1 %v1392_v31 }
 0x2e7   :  { %971 = vmatprep.subr.bf16.mxu1 %v1400_v33 }
 0x2e8   :  { %833 = vmatpush1.bf16.msra.mxu0 %v1395_v34 }
 0x2e9   :  { %834 = vmatprep.subr.bf16.mxu0 %v1403_v36 }
 0x2ea   :  { %972 = vmatpush1.bf16.msra.mxu1 %v1398_v35 }
 0x2eb   :  { %973 = vmatprep.subr.bf16.mxu1 %v1406_v37 }
 0x2ec   :  { %835 = vmatpush1.bf16.msra.mxu0 %v1401_v38 }
 0x2ed   :  { %836 = vmatprep.subr.bf16.mxu0 %v1409_v40 }
 0x2ee   :  { %974 = vmatpush1.bf16.msra.mxu1 %v1404_v39 }
 0x2ef   :  { %975 = vmatprep.subr.bf16.mxu1 %v1412_v41 }
 0x2f0   :  { %837 = vmatpush1.bf16.msra.mxu0 %v1407_v42 }
 0x2f1   :  { %838 = vmatprep.subr.bf16.mxu0 %v1415_v44 }
 0x2f2   :  { %976 = vmatpush1.bf16.msra.mxu1 %v1410_v43 }
 0x2f3   :  { %977 = vmatprep.subr.bf16.mxu1 %v1418_v45 }
 0x2f4   :  { %839 = vmatpush1.bf16.msra.mxu0 %v1413_v46 }
 0x2f6   :  { %978 = vmatpush1.bf16.msra.mxu1 %v1416_v47 }
 0x38b   :  { %v629_v48 = vpop.f32.mrb[12].mxu1 }
 0x38c   :  { %v1287_v49 = vpop.f32.mrb[13].mxu1 }
 0x38d   :  { %v632_v50 = vpop.f32.mrb[14].mxu1 }
 0x38e   :  { %v1288_v51 = vpop.f32.mrb[15].mxu1 }
 0x3aa   :  { %v669_v53 = vpop.f32.mrb[12].mxu0 }
 0x3ab   :  { %v670_v54 = vadd.f32 %v669_v53, %v629_v48  ;;  %v1307_v56 = vpop.f32.mrb[13].mxu0 }
 0x3ac   :  { %v721_v57 = vpop.f32.mrb[16].mxu1  ;;  %v672_v58 = vpop.f32.mrb[14].mxu0 }
 0x3ad   :  { %v680_v59 = vadd.f32 %v678_v52, %v670_v54  ;;  %v722_v60 = vadd.f32 %v721_v57, %v685_v55  ;;  %v1327_v61 = vpop.f32.mrb[17].mxu1  ;;  %v1308_v62 = vpop.f32.mrb[15].mxu0 }
 0x3ae   :  { %v724_v63 = vpop.f32.mrb[18].mxu1 }
 0x3af   :  { %v727_v1 = vpack.c.bf16 %v680_v59, %v680_v59  ;;  %v865_v2 = vpack.c.bf16 %v722_v60, %v722_v60  ;;  %v1328_v3 = vpop.f32.mrb[19].mxu1 }
 0x3b1   :  { %857 = vmatmul.mubr.bf16.vlgmr.msra.gmra.mrb[16].mxu0 %v727_v1  ;;  %996 = vmatmul.mubr.bf16.vlgmr.msra.gmra.mrb[20].mxu1 %v865_v2 }
 0x484   :  { %v858_v4 = vpop.f32.mrb[16].mxu0  ;;  %v997_v5 = vpop.f32.mrb[20].mxu1 }
 0x485   :  { %v1004_v6 = vmul.f32 %v997_v5, %v858_v4  ;;  %v860_v7 = vpop.f32.mrb[17].mxu0  ;;  %v999_v8 = vpop.f32.mrb[21].mxu1 }
 0x486   :  { %v1005_v9 = vmul.f32 %v999_v8, %v860_v7  ;;  %v862_v10 = vpop.f32.mrb[18].mxu0  ;;  %v1001_v11 = vpop.f32.mrb[22].mxu1 }
 0x487   :  { %v1006_v12 = vrot.slane %v1004_v6, 4  ;;  %v863_v13 = vpop.f32.mrb[19].mxu0  ;;  %v1002_v14 = vpop.f32.mrb[23].mxu1 }
 0x488   :  { %v1012_v15 = vrot.slane %v1005_v9, 4 }
 0x489   :  { %v1007_v16 = vadd.f32 %v1006_v12, %v1004_v6 }
 0x48a   :  { %v1013_v17 = vadd.f32 %v1012_v15, %v1005_v9 }
 0x48b   :  { %v1008_v21 = vrot.slane %v1007_v16, 2 }
 0x48c   :  { %v1014_v22 = vrot.slane %v1013_v17, 2 }
 0x48d   :  { %v1009_v0 = vadd.f32 %v1008_v21, %v1007_v16 }
 0x48e   :  { %v1015_v23 = vadd.f32 %v1014_v22, %v1013_v17 }
 0x48f   :  { %v1010_v26 = vrot.slane %v1009_v0, 1 }
 0x490   :  { %v1016_v27 = vrot.slane %v1015_v23, 1 }
 0x491   :  { %v1011_v28 = vadd.f32 %v1010_v26, %v1009_v0 }
 0x492   :  { %v1017_v29 = vadd.f32 %v1016_v27, %v1015_v23 }
 0x494   :  { %v1020_v31 = vcombine.low %v1011_v28, %v1017_v29 }
 0x496   :  { %v1027_v32 = vrot.slane %v1020_v31, %v1026_v30 }
 0x498   :  { %v1034_v33 = vrot.slane %v1027_v32, %v1026_v30 }
 0x49a   :  { %1040 = vst.msk [vmem:[#allocation7] sm:$0x3] %vm1038_vm2, %v1034_v33 }
 0x49b   :  { %1474 = shalt.err (!%p1471_p6)
}
 0x49c   :  { %s1475_s17 = scalar_lea.hbm %s1772_s4, 32 }
 0x49d   :  { %p1476_p7 = scmp.ne.s32.totalorder %s1772_s4, %s1475_s17  ;;  %p1479_p8 = scmp.lt.u32.totalorder %s1475_s17, %s1772_s4 }
 0x49f   :  { %p1481_p9 = pnand %p1479_p8, %p1476_p7 }
 0x4a1   :  { %1484 = shalt.err (!%p1481_p9)
}
 0x4a2   :  { %1050 = dma.vmem_to_hbm [thread:$0]  %s1048_s13, 32, %s1772_s4, [#allocation4]  }
 0x4a3   :  { %1489 = dma.done.wait [#allocation4], 32  }
 0x4a4   :  { %1490 = vsyncadd [#allocation4], 4294967264 }
 0x4a5   :  { %1054 = vsyncpa [#allocation3], 1 }
 0x4a6   :  { %1055 = vsyncpa [#allocation6], 1 }
 0x4a7   :  { %1056 = vsyncpa [#allocation4], 1 }

</bundles_post_ra>
